<compile_context>
chip_gen: v7x
topology: tpu7x:2x2x1
jax: 0.10.0
libtpu: 0.0.40
codegen_flags: <defaults>
</compile_context>

<pallas_src>
import functools
import math

import jax
import jax.numpy as jnp
from jax.experimental import pallas as pl
from jax.experimental.pallas import tpu as pltpu


_INV_SQRT2 = 1.0 / math.sqrt(2.0)
_MIB = 1024 * 1024


# --------------------------------------------------------------------------- #
# Kernel
# --------------------------------------------------------------------------- #
def _lm_head_kernel(feat_ref, wd_ref, params_ref, wdec_ref, out_ref, h_ref,
                    *, eps):
    # feat_ref:   [TM, H]  token-feature tile
    # wd_ref:     [H, H]   dense weight, pre-transposed (in x out), Buffered(1)
    # params_ref: [3, H]   row0 dense bias, row1 LN gamma, row2 LN beta
    # wdec_ref:   [H, TN]  decoder weight tile, pre-transposed (in x out)
    # out_ref:    [TM, TN] logits tile
    # h_ref:      [TM, H]  scratch (decoder-weight dtype): LayerNorm'd
    #                      activations, carried across the vocab grid axis.
    #
    # NOTE: the scratch carry requires the vocab axis (axis 1) to be the
    # innermost, sequentially-executed ("arbitrary") grid axis.  Do not
    # reorder the grid or mark axis 1 "parallel".

    # Heavy per-token work runs once per token tile (first vocab step only).
    @pl.when(pl.program_id(1) == 0)
    def _():
        p = params_ref[...].astype(jnp.float32)
        bias = p[0:1, :]
        gamma = p[1:2, :]
        beta = p[2:3, :]

        a = feat_ref[...]
        if a.dtype != wd_ref.dtype:           # trace-time; cast the SMALL tile
            a = a.astype(wd_ref.dtype)

        # dense: feat @ Wd + b   (MXU, f32 accumulation; no weight upcast)
        h = jnp.dot(a, wd_ref[...], preferred_element_type=jnp.float32) + bias

        # exact (erf) GELU == torch.nn.functional.gelu default
        h = 0.5 * h * (1.0 + jax.lax.erf(h * _INV_SQRT2))

        # LayerNorm over hidden dim (biased variance) + affine
        mean = jnp.mean(h, axis=-1, keepdims=True)
        centered = h - mean
        var = jnp.mean(centered * centered, axis=-1, keepdims=True)
        h = centered * jax.lax.rsqrt(var + eps)

        # Single cast here (scratch dtype == decoder weight dtype) so the
        # steady-state vocab loop below has NO per-step cast.
        h_ref[...] = (h * gamma + beta).astype(h_ref.dtype)

    # Decoder matmul for this vocab tile (steady state: this is the whole body).
    out_ref[...] = jnp.dot(h_ref[...], wdec_ref[...],
                           preferred_element_type=jnp.float32
                           ).astype(out_ref.dtype)


# --------------------------------------------------------------------------- #
# One-time parameter preparation (call once at model-build time, not per step)
# --------------------------------------------------------------------------- #
def prepare_lm_head_params(w_dense, b_dense, ln_w, ln_b, w_dec,
                           *, vocab_multiple=128):
    """Build-time prep: transpose Linear weights from PyTorch [out, in] to
    [in, out], fuse the three [H] vectors into one [3, H] array (single DMA),
    and pad the decoder vocab dim to a lane-dense multiple ONCE (so the hot
    path never copies the [H,V] weight).

    Returns (wd_t [H,H], params [3,H], wdec_t [H,Vp], vocab_size V).
    """
    wd_t = jnp.transpose(w_dense)                        # [H, H]
    wdec_t = jnp.transpose(w_dec)                        # [H, V]
    V = wdec_t.shape[1]
    v_pad = (-V) % vocab_multiple
    if v_pad:
        wdec_t = jnp.pad(wdec_t, ((0, 0), (0, v_pad)))   # one-time copy
    params = jnp.stack([b_dense, ln_w, ln_b], axis=0)    # [3, H]
    return wd_t, params, wdec_t, V


# --------------------------------------------------------------------------- #
# Tile / VMEM-budget selection
# --------------------------------------------------------------------------- #
def _vmem_capacity_bytes():
    try:
        return int(pltpu.get_tpu_info().vmem_capacity_bytes)
    except Exception:
        return 64 * _MIB  # conservative (v7x-sized) fallback


def _vocab_tile_options(Vp, max_tile):
    """Lane-dense (multiple-of-128) tiles <= max_tile dividing Vp, descending."""
    if Vp <= 128:
        return [Vp]
    divs = [t for t in range(128, min(max_tile, Vp) + 1, 128) if Vp % t == 0]
    if not divs:
        return [Vp]  # Vp not a multiple of 128 (prepare_* normally prevents this)
    return sorted(divs, reverse=True)


def _select_tiles(T, Vp, H, feat_bytes, w_bytes, out_bytes, budget,
                  tm_req=None, tn_req=None):
    """Pick (tm, tn): tm is the decoder-weight reuse factor (bigger is better,
    until VMEM runs out); tn stays lane-dense and divides Vp."""
    tm_target = tm_req if tm_req is not None else (1024 if budget >= 96 * _MIB
                                                   else 512)
    tn_target = tn_req if tn_req is not None else 2048

    tm = min(tm_target, T)
    if tm < T and tm % 8:
        tm = -(-tm // 8) * 8  # sublane multiple when not the full token dim

    tn_options = _vocab_tile_options(Vp, tn_target)
    ti = 0
    tn = tn_options[ti]

    def usage(tm_, tn_):
        return (H * H * w_bytes                 # dense W  (Buffered(1))
                + 3 * H * w_bytes               # fused params (Buffered(1))
                + 2 * tm_ * H * feat_bytes      # feature tile (double-buffered)
                + 2 * H * tn_ * w_bytes         # decoder tile (double-buffered)
                + 2 * tm_ * tn_ * out_bytes     # logits tile  (double-buffered)
                + tm_ * H * w_bytes)            # LN'd activation scratch

    while usage(tm, tn) > 0.85 * budget:
        if ti + 1 < len(tn_options) and tn_options[ti + 1] >= 512:
            ti += 1; tn = tn_options[ti]
        elif tm_req is None and tm > 256:
            tm = max(256, tm // 2)
        elif ti + 1 < len(tn_options):
            ti += 1; tn = tn_options[ti]
        elif tm_req is None and tm > 128:
            tm = max(128, tm // 2)
        else:
            break
    return tm, tn


# --------------------------------------------------------------------------- #
# Wrapper
# --------------------------------------------------------------------------- #
def edgeformer_lm_head(features, wd_t, params, wdec_t, *, vocab_size=None,
                       eps=1e-12, tm=None, tn=None):
    """features: [B,S,H]; wd_t: [H,H]; params: [3,H]; wdec_t: [H,Vp] (from
    prepare_lm_head_params).  Returns logits [B, S, vocab_size]."""
    B, S, H = features.shape
    Vp = wdec_t.shape[1]
    if vocab_size is None:
        vocab_size = Vp
    T = B * S
    feat2d = features.reshape(T, H)

    feat_bytes = jnp.dtype(features.dtype).itemsize
    w_bytes = jnp.dtype(wdec_t.dtype).itemsize
    out_bytes = feat_bytes

    capacity = _vmem_capacity_bytes()
    # Leave headroom under physical VMEM for compiler-internal scratch:
    #   v7x (64 MiB)  -> ~48 MiB ; v5e/v6e (128 MiB) -> ~112 MiB.
    vmem_limit = max(capacity - 16 * _MIB, 32 * _MIB)

    tm_eff, tn_eff = _select_tiles(T, Vp, H, feat_bytes, w_bytes, out_bytes,
                                   vmem_limit, tm_req=tm, tn_req=tn)

    # Token padding only touches the (small) activation tensor.
    tok_pad = (-T) % tm_eff
    if tok_pad:
        feat2d = jnp.pad(feat2d, ((0, tok_pad), (0, 0)))
    Tp = T + tok_pad

    kernel = functools.partial(_lm_head_kernel, eps=eps)

    def _build_and_run(use_buffered_one):
        const_kw = ({"pipeline_mode": pl.Buffered(1)} if use_buffered_one
                    else {})
        grid_spec = pltpu.PrefetchScalarGridSpec(
            num_scalar_prefetch=0,
            grid=(Tp // tm_eff, Vp // tn_eff),
            in_specs=[
                pl.BlockSpec((tm_eff, H), lambda i, j: (i, 0)),      # features
                pl.BlockSpec((H, H), lambda i, j: (0, 0), **const_kw),   # Wd
                pl.BlockSpec((3, H), lambda i, j: (0, 0), **const_kw),   # b/g/b
                pl.BlockSpec((H, tn_eff), lambda i, j: (0, j)),      # Wdec
            ],
            out_specs=pl.BlockSpec((tm_eff, tn_eff), lambda i, j: (i, j)),
            # Scratch in the decoder-weight dtype: written once per token tile,
            # consumed without any cast on every vocab step.
            scratch_shapes=[pltpu.VMEM((tm_eff, H), wdec_t.dtype)],
        )
        return pl.pallas_call(
            kernel,
            out_shape=jax.ShapeDtypeStruct((Tp, Vp), features.dtype),
            grid_spec=grid_spec,
            compiler_params=pltpu.CompilerParams(
                # vocab axis MUST stay "arbitrary" (scratch carry); token axis
                # is independent -> megacore-shardable.
                dimension_semantics=("parallel", "arbitrary"),
                vmem_limit_bytes=int(vmem_limit),
            ),
        )(feat2d, wd_t, params, wdec_t)

    try:
        out = _build_and_run(True)
    except Exception:
        # Fallback for jax versions without pipeline_mode / Buffered(1) support.
        out = _build_and_run(False)

    if tok_pad or vocab_size != Vp:
        # Only taken when T or V were padded; this slice materializes a copy,
        # so prefer shapes where T % tm == 0 and V % 128 == 0.
        out = out[:T, :vocab_size]
    return out.reshape(B, S, vocab_size)


# --------------------------------------------------------------------------- #
# Pure-JAX reference (matches the PyTorch module)
# --------------------------------------------------------------------------- #
def _reference(features, w_dense, b_dense, ln_w, ln_b, w_dec, eps=1e-12):
    x = features.astype(jnp.float32) @ w_dense.T.astype(jnp.float32) + b_dense
    x = jax.nn.gelu(x, approximate=False)
    mean = jnp.mean(x, axis=-1, keepdims=True)
    var = jnp.mean((x - mean) ** 2, axis=-1, keepdims=True)
    x = (x - mean) / jnp.sqrt(var + eps)
    x = x * ln_w + ln_b
    return x @ w_dec.T.astype(jnp.float32)


if __name__ == "__main__":
    B, S, H, V = 2, 8, 32, 128
    eps = 1e-12

    key = jax.random.PRNGKey(0)
    k1, k2, k3, k4 = jax.random.split(key, 4)

    features = jax.random.normal(k1, (B, S, H), dtype=jnp.float32)
    bound = 1.0 / math.sqrt(H)
    w_dense = jax.random.uniform(k2, (H, H), minval=-bound, maxval=bound,
                                 dtype=jnp.float32)
    b_dense = jax.random.uniform(k3, (H,), minval=-bound, maxval=bound,
                                 dtype=jnp.float32)
    ln_w = jnp.ones((H,), dtype=jnp.float32)
    ln_b = jnp.zeros((H,), dtype=jnp.float32)
    w_dec = jax.random.uniform(k4, (V, H), minval=-bound, maxval=bound,
                               dtype=jnp.float32)

    # One-time param prep (transposes + fusion + vocab padding) — build time.
    wd_t, params, wdec_t, vocab = prepare_lm_head_params(
        w_dense, b_dense, ln_w, ln_b, w_dec)

    out = edgeformer_lm_head(features, wd_t, params, wdec_t,
                             vocab_size=vocab, eps=eps)
    out = jax.block_until_ready(out)

    ref = _reference(features, w_dense, b_dense, ln_w, ln_b, w_dec, eps=eps)
    assert out.shape == (B, S, V)
    assert jnp.allclose(out, ref, atol=1e-4, rtol=1e-4)

    print("KERNEL_OK")
</pallas_src>

<mosaic_0001>
module attributes {stable_mosaic.version = 11 : i64} {
  func.func @_lm_head_kernel(%arg0: i32, %arg1: i32, %arg2: memref<16x32xf32, #tpu.memory_space<vmem>>, %arg3: memref<32x32xf32, #tpu.memory_space<vmem>>, %arg4: memref<3x32xf32, #tpu.memory_space<vmem>>, %arg5: memref<32x128xf32, #tpu.memory_space<vmem>>, %arg6: memref<16x128xf32, #tpu.memory_space<vmem>>, %arg7: memref<16x32xf32, #tpu.memory_space<vmem>>) attributes {dimension_semantics = [#tpu.dimension_semantics<parallel>, #tpu.dimension_semantics<arbitrary>], iteration_bounds = array<i64: 1, 1>, scalar_prefetch = 0 : i64, scratch_operands = 1 : i64, tpu.core_type = #tpu.core_type<tc>, window_params = [{transform_indices = @transform_0, window_bounds = array<i64: 16, 32>}, {pipeline_mode = #tpu.pipeline_mode<synchronous>, transform_indices = @transform_1, window_bounds = array<i64: 32, 32>}, {pipeline_mode = #tpu.pipeline_mode<synchronous>, transform_indices = @transform_2, window_bounds = array<i64: 3, 32>}, {transform_indices = @transform_3, window_bounds = array<i64: 32, 128>}, {transform_indices = @transform_4, window_bounds = array<i64: 16, 128>}]} {
    %c0_i32 = arith.constant 0 : i32
    %0 = arith.cmpi eq, %arg1, %c0_i32 : i32
    %1 = arith.extui %0 : i1 to i32
    %c0_i32_0 = arith.constant 0 : i32
    %2 = arith.cmpi ne, %1, %c0_i32_0 : i32
    scf.if %2 {
      %c0_6 = arith.constant 0 : index
      %c0_7 = arith.constant 0 : index
      %7 = vector.load %arg4[%c0_6, %c0_7] : memref<3x32xf32, #tpu.memory_space<vmem>>, vector<3x32xf32>
      %8 = vector.extract_strided_slice %7 {offsets = [0, 0], sizes = [1, 32], strides = [1, 1]} : vector<3x32xf32> to vector<1x32xf32>
      %9 = vector.extract_strided_slice %7 {offsets = [1, 0], sizes = [1, 32], strides = [1, 1]} : vector<3x32xf32> to vector<1x32xf32>
      %10 = vector.extract_strided_slice %7 {offsets = [2, 0], sizes = [1, 32], strides = [1, 1]} : vector<3x32xf32> to vector<1x32xf32>
      %c0_8 = arith.constant 0 : index
      %c0_9 = arith.constant 0 : index
      %11 = vector.load %arg2[%c0_8, %c0_9] : memref<16x32xf32, #tpu.memory_space<vmem>>, vector<16x32xf32>
      %c0_10 = arith.constant 0 : index
      %c0_11 = arith.constant 0 : index
      %12 = vector.load %arg3[%c0_10, %c0_11] : memref<32x32xf32, #tpu.memory_space<vmem>>, vector<32x32xf32>
      %cst_12 = arith.constant dense<0.000000e+00> : vector<16x32xf32>
      %13 = tpu.matmul %11, %12, %cst_12 {dimension_numbers = #tpu.dot_dimension_numbers<[1], [0], [0], [1], [0, 0, 1, 1], [], []>} : vector<16x32xf32>, vector<32x32xf32>, vector<16x32xf32> -> vector<16x32xf32>
      %14 = vector.broadcast %8 : vector<1x32xf32> to vector<16x32xf32>
      %15 = arith.addf %13, %14 : vector<16x32xf32>
      %cst_13 = arith.constant 5.000000e-01 : f32
      %16 = vector.broadcast %cst_13 : f32 to vector<16x32xf32>
      %17 = arith.mulf %16, %15 : vector<16x32xf32>
      %cst_14 = arith.constant 0.707106769 : f32
      %18 = vector.broadcast %cst_14 : f32 to vector<16x32xf32>
      %19 = arith.mulf %15, %18 : vector<16x32xf32>
      %20 = math.erf %19 : vector<16x32xf32>
      %cst_15 = arith.constant 1.000000e+00 : f32
      %21 = vector.broadcast %cst_15 : f32 to vector<16x32xf32>
      %22 = arith.addf %21, %20 : vector<16x32xf32>
      %23 = arith.mulf %17, %22 : vector<16x32xf32>
      %cst_16 = arith.constant dense<0.000000e+00> : vector<16xf32>
      %24 = vector.multi_reduction <add>, %23, %cst_16 [1] : vector<16x32xf32> to vector<16xf32>
      %25 = vector.shape_cast %24 : vector<16xf32> to vector<16x1xf32>
      %cst_17 = arith.constant 3.200000e+01 : f32
      %26 = vector.broadcast %cst_17 : f32 to vector<16x1xf32>
      %27 = arith.divf %25, %26 : vector<16x1xf32>
      %28 = vector.broadcast %27 : vector<16x1xf32> to vector<16x32xf32>
      %29 = arith.subf %23, %28 : vector<16x32xf32>
      %30 = arith.mulf %29, %29 : vector<16x32xf32>
      %cst_18 = arith.constant dense<0.000000e+00> : vector<16xf32>
      %31 = vector.multi_reduction <add>, %30, %cst_18 [1] : vector<16x32xf32> to vector<16xf32>
      %32 = vector.shape_cast %31 : vector<16xf32> to vector<16x1xf32>
      %cst_19 = arith.constant 3.200000e+01 : f32
      %33 = vector.broadcast %cst_19 : f32 to vector<16x1xf32>
      %34 = arith.divf %32, %33 : vector<16x1xf32>
      %cst_20 = arith.constant 9.99999996E-13 : f32
      %35 = vector.broadcast %cst_20 : f32 to vector<16x1xf32>
      %36 = arith.addf %34, %35 : vector<16x1xf32>
      %37 = math.rsqrt %36 : vector<16x1xf32>
      %38 = vector.broadcast %37 : vector<16x1xf32> to vector<16x32xf32>
      %39 = arith.mulf %29, %38 : vector<16x32xf32>
      %40 = vector.broadcast %9 : vector<1x32xf32> to vector<16x32xf32>
      %41 = arith.mulf %39, %40 : vector<16x32xf32>
      %42 = vector.broadcast %10 : vector<1x32xf32> to vector<16x32xf32>
      %43 = arith.addf %41, %42 : vector<16x32xf32>
      %c0_21 = arith.constant 0 : index
      %c0_22 = arith.constant 0 : index
      %44 = vector.load %arg7[%c0_21, %c0_22] : memref<16x32xf32, #tpu.memory_space<vmem>>, vector<16x32xf32>
      tpu.vector_store %arg7[%c0_21, %c0_22], %43 {strides = array<i32>} : memref<16x32xf32, #tpu.memory_space<vmem>>, vector<16x32xf32>,
    } else {
    }
    %c0 = arith.constant 0 : index
    %c0_1 = arith.constant 0 : index
    %3 = vector.load %arg7[%c0, %c0_1] : memref<16x32xf32, #tpu.memory_space<vmem>>, vector<16x32xf32>
    %c0_2 = arith.constant 0 : index
    %c0_3 = arith.constant 0 : index
    %4 = vector.load %arg5[%c0_2, %c0_3] : memref<32x128xf32, #tpu.memory_space<vmem>>, vector<32x128xf32>
    %cst = arith.constant dense<0.000000e+00> : vector<16x128xf32>
    %5 = tpu.matmul %3, %4, %cst {dimension_numbers = #tpu.dot_dimension_numbers<[1], [0], [0], [1], [0, 0, 1, 1], [], []>} : vector<16x32xf32>, vector<32x128xf32>, vector<16x128xf32> -> vector<16x128xf32>
    %c0_4 = arith.constant 0 : index
    %c0_5 = arith.constant 0 : index
    %6 = vector.load %arg6[%c0_4, %c0_5] : memref<16x128xf32, #tpu.memory_space<vmem>>, vector<16x128xf32>
    tpu.vector_store %arg6[%c0_4, %c0_5], %5 {strides = array<i32>} : memref<16x128xf32, #tpu.memory_space<vmem>>, vector<16x128xf32>,
    return
  }
  func.func @transform_0(%arg0: i32, %arg1: i32) -> (i32, i32) {
    %c0_i32 = arith.constant 0 : i32
    %c0_i32_0 = arith.constant 0 : i32
    return %arg0, %c0_i32 : i32, i32
  }
  func.func @transform_1(%arg0: i32, %arg1: i32) -> (i32, i32) {
    %c0_i32 = arith.constant 0 : i32
    %c0_i32_0 = arith.constant 0 : i32
    %c0_i32_1 = arith.constant 0 : i32
    return %c0_i32, %c0_i32_0 : i32, i32
  }
  func.func @transform_2(%arg0: i32, %arg1: i32) -> (i32, i32) {
    %c0_i32 = arith.constant 0 : i32
    %c0_i32_0 = arith.constant 0 : i32
    %c0_i32_1 = arith.constant 0 : i32
    return %c0_i32, %c0_i32_0 : i32, i32
  }
  func.func @transform_3(%arg0: i32, %arg1: i32) -> (i32, i32) {
    %c0_i32 = arith.constant 0 : i32
    %c0_i32_0 = arith.constant 0 : i32
    return %c0_i32, %arg1 : i32, i32
  }
  func.func @transform_4(%arg0: i32, %arg1: i32) -> (i32, i32) {
    %c0_i32 = arith.constant 0 : i32
    return %arg0, %arg1 : i32, i32
  }
}

module attributes {stable_mosaic.version = 11 : i64} {
  func.func @_lm_head_kernel(%arg0: i32, %arg1: i32, %arg2: memref<16x32xf32, #tpu.memory_space<vmem>>, %arg3: memref<32x32xf32, #tpu.memory_space<vmem>>, %arg4: memref<3x32xf32, #tpu.memory_space<vmem>>, %arg5: memref<32x128xf32, #tpu.memory_space<vmem>>, %arg6: memref<16x128xf32, #tpu.memory_space<vmem>>, %arg7: memref<16x32xf32, #tpu.memory_space<vmem>>) attributes {dimension_semantics = [#tpu.dimension_semantics<parallel>, #tpu.dimension_semantics<arbitrary>], iteration_bounds = array<i64: 1, 1>, scalar_prefetch = 0 : i64, scratch_operands = 1 : i64, tpu.core_type = #tpu.core_type<tc>, window_params = [{transform_indices = @transform_0, window_bounds = array<i64: 16, 32>}, {pipeline_mode = #tpu.pipeline_mode<synchronous>, transform_indices = @transform_1, window_bounds = array<i64: 32, 32>}, {pipeline_mode = #tpu.pipeline_mode<synchronous>, transform_indices = @transform_2, window_bounds = array<i64: 3, 32>}, {transform_indices = @transform_3, window_bounds = array<i64: 32, 128>}, {transform_indices = @transform_4, window_bounds = array<i64: 16, 128>}]} {
    %c0_i32 = arith.constant 0 : i32
    %0 = arith.cmpi eq, %arg1, %c0_i32 : i32
    %1 = arith.extui %0 : i1 to i32
    %c0_i32_0 = arith.constant 0 : i32
    %2 = arith.cmpi ne, %1, %c0_i32_0 : i32
    scf.if %2 {
      %c0_6 = arith.constant 0 : index
      %c0_7 = arith.constant 0 : index
      %7 = vector.load %arg4[%c0_6, %c0_7] : memref<3x32xf32, #tpu.memory_space<vmem>>, vector<3x32xf32>
      %8 = vector.extract_strided_slice %7 {offsets = [0, 0], sizes = [1, 32], strides = [1, 1]} : vector<3x32xf32> to vector<1x32xf32>
      %9 = vector.extract_strided_slice %7 {offsets = [1, 0], sizes = [1, 32], strides = [1, 1]} : vector<3x32xf32> to vector<1x32xf32>
      %10 = vector.extract_strided_slice %7 {offsets = [2, 0], sizes = [1, 32], strides = [1, 1]} : vector<3x32xf32> to vector<1x32xf32>
      %c0_8 = arith.constant 0 : index
      %c0_9 = arith.constant 0 : index
      %11 = vector.load %arg2[%c0_8, %c0_9] : memref<16x32xf32, #tpu.memory_space<vmem>>, vector<16x32xf32>
      %c0_10 = arith.constant 0 : index
      %c0_11 = arith.constant 0 : index
      %12 = vector.load %arg3[%c0_10, %c0_11] : memref<32x32xf32, #tpu.memory_space<vmem>>, vector<32x32xf32>
      %cst_12 = arith.constant dense<0.000000e+00> : vector<16x32xf32>
      %13 = tpu.matmul %11, %12, %cst_12 {dimension_numbers = #tpu.dot_dimension_numbers<[1], [0], [0], [1], [0, 0, 1, 1], [], []>} : vector<16x32xf32>, vector<32x32xf32>, vector<16x32xf32> -> vector<16x32xf32>
      %14 = vector.broadcast %8 : vector<1x32xf32> to vector<16x32xf32>
      %15 = arith.addf %13, %14 : vector<16x32xf32>
      %cst_13 = arith.constant 5.000000e-01 : f32
      %16 = vector.broadcast %cst_13 : f32 to vector<16x32xf32>
      %17 = arith.mulf %16, %15 : vector<16x32xf32>
      %cst_14 = arith.constant 0.707106769 : f32
      %18 = vector.broadcast %cst_14 : f32 to vector<16x32xf32>
      %19 = arith.mulf %15, %18 : vector<16x32xf32>
      %20 = math.erf %19 : vector<16x32xf32>
      %cst_15 = arith.constant 1.000000e+00 : f32
      %21 = vector.broadcast %cst_15 : f32 to vector<16x32xf32>
      %22 = arith.addf %21, %20 : vector<16x32xf32>
      %23 = arith.mulf %17, %22 : vector<16x32xf32>
      %cst_16 = arith.constant dense<0.000000e+00> : vector<16xf32>
      %24 = vector.multi_reduction <add>, %23, %cst_16 [1] : vector<16x32xf32> to vector<16xf32>
      %25 = vector.shape_cast %24 : vector<16xf32> to vector<16x1xf32>
      %cst_17 = arith.constant 3.200000e+01 : f32
      %26 = vector.broadcast %cst_17 : f32 to vector<16x1xf32>
      %27 = arith.divf %25, %26 : vector<16x1xf32>
      %28 = vector.broadcast %27 : vector<16x1xf32> to vector<16x32xf32>
      %29 = arith.subf %23, %28 : vector<16x32xf32>
      %30 = arith.mulf %29, %29 : vector<16x32xf32>
      %cst_18 = arith.constant dense<0.000000e+00> : vector<16xf32>
      %31 = vector.multi_reduction <add>, %30, %cst_18 [1] : vector<16x32xf32> to vector<16xf32>
      %32 = vector.shape_cast %31 : vector<16xf32> to vector<16x1xf32>
      %cst_19 = arith.constant 3.200000e+01 : f32
      %33 = vector.broadcast %cst_19 : f32 to vector<16x1xf32>
      %34 = arith.divf %32, %33 : vector<16x1xf32>
      %cst_20 = arith.constant 9.99999996E-13 : f32
      %35 = vector.broadcast %cst_20 : f32 to vector<16x1xf32>
      %36 = arith.addf %34, %35 : vector<16x1xf32>
      %37 = math.rsqrt %36 : vector<16x1xf32>
      %38 = vector.broadcast %37 : vector<16x1xf32> to vector<16x32xf32>
      %39 = arith.mulf %29, %38 : vector<16x32xf32>
      %40 = vector.broadcast %9 : vector<1x32xf32> to vector<16x32xf32>
      %41 = arith.mulf %39, %40 : vector<16x32xf32>
      %42 = vector.broadcast %10 : vector<1x32xf32> to vector<16x32xf32>
      %43 = arith.addf %41, %42 : vector<16x32xf32>
      %c0_21 = arith.constant 0 : index
      %c0_22 = arith.constant 0 : index
      %44 = vector.load %arg7[%c0_21, %c0_22] : memref<16x32xf32, #tpu.memory_space<vmem>>, vector<16x32xf32>
      tpu.vector_store %arg7[%c0_21, %c0_22], %43 {strides = array<i32>} : memref<16x32xf32, #tpu.memory_space<vmem>>, vector<16x32xf32>,
    } else {
    }
    %c0 = arith.constant 0 : index
    %c0_1 = arith.constant 0 : index
    %3 = vector.load %arg7[%c0, %c0_1] : memref<16x32xf32, #tpu.memory_space<vmem>>, vector<16x32xf32>
    %c0_2 = arith.constant 0 : index
    %c0_3 = arith.constant 0 : index
    %4 = vector.load %arg5[%c0_2, %c0_3] : memref<32x128xf32, #tpu.memory_space<vmem>>, vector<32x128xf32>
    %cst = arith.constant dense<0.000000e+00> : vector<16x128xf32>
    %5 = tpu.matmul %3, %4, %cst {dimension_numbers = #tpu.dot_dimension_numbers<[1], [0], [0], [1], [0, 0, 1, 1], [], []>} : vector<16x32xf32>, vector<32x128xf32>, vector<16x128xf32> -> vector<16x128xf32>
    %c0_4 = arith.constant 0 : index
    %c0_5 = arith.constant 0 : index
    %6 = vector.load %arg6[%c0_4, %c0_5] : memref<16x128xf32, #tpu.memory_space<vmem>>, vector<16x128xf32>
    tpu.vector_store %arg6[%c0_4, %c0_5], %5 {strides = array<i32>} : memref<16x128xf32, #tpu.memory_space<vmem>>, vector<16x128xf32>,
    return
  }
  func.func @transform_0(%arg0: i32, %arg1: i32) -> (i32, i32) {
    %c0_i32 = arith.constant 0 : i32
    %c0_i32_0 = arith.constant 0 : i32
    return %arg0, %c0_i32 : i32, i32
  }
  func.func @transform_1(%arg0: i32, %arg1: i32) -> (i32, i32) {
    %c0_i32 = arith.constant 0 : i32
    %c0_i32_0 = arith.constant 0 : i32
    %c0_i32_1 = arith.constant 0 : i32
    return %c0_i32, %c0_i32_0 : i32, i32
  }
  func.func @transform_2(%arg0: i32, %arg1: i32) -> (i32, i32) {
    %c0_i32 = arith.constant 0 : i32
    %c0_i32_0 = arith.constant 0 : i32
    %c0_i32_1 = arith.constant 0 : i32
    return %c0_i32, %c0_i32_0 : i32, i32
  }
  func.func @transform_3(%arg0: i32, %arg1: i32) -> (i32, i32) {
    %c0_i32 = arith.constant 0 : i32
    %c0_i32_0 = arith.constant 0 : i32
    return %c0_i32, %arg1 : i32, i32
  }
  func.func @transform_4(%arg0: i32, %arg1: i32) -> (i32, i32) {
    %c0_i32 = arith.constant 0 : i32
    return %arg0, %arg1 : i32, i32
  }
}

</mosaic_0001>

<bundles_post_ra>
// kernel: tpu_custom_call.1
= control target key start
LH: loop header
LB: loop body
LE: loop exit
PB: predicated region body
PF: predicated region fallthrough
CT: control target
= control target key end

     0   :  { %9 = vsyncpa [#allocation4], 0  ;;  %s588_s0 = inlined_call_operand.hbm [shape: f32[16,32], index: 0, kind: input, shape index: {}]   ;;  %s589_s1 = inlined_call_operand.hbm [shape: f32[32,32], index: 1, kind: input, shape index: {}]   ;;  %s590_s2 = inlined_call_operand.vmem [shape: f32[3,32], index: 2, kind: input, shape index: {}]   ;;  %s591_s3 = inlined_call_operand.hbm [shape: f32[32,128], index: 3, kind: input, shape index: {}]   ;;  %s592_s4 = inlined_call_operand.hbm [shape: f32[16,128], index: 4, kind: output, shape index: {}]  }
   0x1   :  { %10 = vsyncpa [#allocation7], 0 }
   0x2   :  { %11 = vsyncpa [#allocation5], 0  ;;  %s477_s15 = smov [#allocation6]   ;;  %s478_s17 = smov [#allocation3]  }
   0x3   :  { %s29_s16 = sshll.u32 %s477_s15, 4  ;;  %s17_s18 = sshll.u32 %s478_s17, 4  ;;  %s30_s16 = int_to_ptr.vmem [resolvable:$true] %s29_s16  ;;  %s508_s18 = int_to_ptr.vmem [resolvable:$true] %s17_s18 }
   0x4   :  { %s383_s21 = scalar_lea.hbm %s589_s1, 512 }
   0x5   :  { %p384_p0 = scmp.ne.s32.totalorder %s589_s1, %s383_s21  ;;  %p387_p1 = scmp.lt.u32.totalorder %s383_s21, %s589_s1 }
   0x7   :  { %p389_p2 = pnand %p387_p1, %p384_p0 }
   0x9   :  { %392 = shalt.err (!%p389_p2)
}
   0xa   :  { %s393_s26 = scalar_lea.vmem %s30_s16, 512  ;;  %p398_p4 = scmp.lt.s32.totalorder %s30_s16, %s30_s16 }
   0xb   :  { %p394_p3 = scmp.ne.s32.totalorder %s30_s16, %s393_s26  ;;  %p399_p5 = scmp.lt.s32.totalorder %s393_s26, %s393_s26 }
   0xd   :  { %p400_p6 = por %p399_p5, %p398_p4 }
   0xf   :  { %p401_p7 = pnand %p400_p6, %p394_p3 }
  0x11   :  { %404 = shalt.err (!%p401_p7)
}
  0x12   :  { %s479_s27 = smov 128   ;;  %s480_s28 = smov 8  }
  0x13   :  { %35 = dma.hbm_to_vmem [thread:$0]  %s589_s1, 512, %s30_s16, [#allocation7], %s479_s27, %s479_s27, %s480_s28  }
  0x14   :  { %s405_s7 = scalar_lea.hbm %s588_s0, 256 }
  0x15   :  { %p406_p8 = scmp.ne.s32.totalorder %s588_s0, %s405_s7  ;;  %p409_p9 = scmp.lt.u32.totalorder %s405_s7, %s588_s0 }
  0x17   :  { %p411_p10 = pnand %p409_p9, %p406_p8 }
  0x19   :  { %414 = shalt.err (!%p411_p10)
}
  0x1a   :  { %s415_s12 = scalar_lea.vmem %s508_s18, 256  ;;  %p420_p12 = scmp.lt.s32.totalorder %s508_s18, %s508_s18 }
  0x1b   :  { %p416_p11 = scmp.ne.s32.totalorder %s508_s18, %s415_s12  ;;  %p421_p13 = scmp.lt.s32.totalorder %s415_s12, %s415_s12 }
  0x1d   :  { %p422_p0 = por %p421_p13, %p420_p12 }
  0x1f   :  { %p423_p1 = pnand %p422_p0, %p416_p11 }
  0x21   :  { %426 = shalt.err (!%p423_p1)
}
  0x22   :  { %23 = dma.hbm_to_vmem [thread:$0]  %s588_s0, 256, %s508_s18, [#allocation4], %s479_s27, %s479_s27, %s480_s28  }
  0x23   :  { %s481_s14 = smov [#allocation8]   ;;  %s427_s19 = scalar_lea.hbm %s591_s3, 512 }
  0x24   :  { %s43_s15 = sshll.u32 %s481_s14, 4  ;;  %p428_p2 = scmp.ne.s32.totalorder %s591_s3, %s427_s19  ;;  %s44_s15 = int_to_ptr.vmem [resolvable:$true] %s43_s15 }
  0x25   :  { %p431_p3 = scmp.lt.u32.totalorder %s427_s19, %s591_s3 }
  0x27   :  { %p433_p4 = pnand %p431_p3, %p428_p2 }
  0x29   :  { %436 = shalt.err (!%p433_p4)
}
  0x2a   :  { %s437_s24 = scalar_lea.vmem %s44_s15, 512  ;;  %p442_p6 = scmp.lt.s32.totalorder %s44_s15, %s44_s15 }
  0x2b   :  { %p438_p5 = scmp.ne.s32.totalorder %s44_s15, %s437_s24  ;;  %p443_p7 = scmp.lt.s32.totalorder %s437_s24, %s437_s24 }
  0x2d   :  { %p444_p8 = por %p443_p7, %p442_p6 }
  0x2f   :  { %p445_p9 = pnand %p444_p8, %p438_p5 }
  0x31   :  { %448 = shalt.err (!%p445_p9)
}
  0x32   :  { %49 = dma.hbm_to_vmem [thread:$0]  %s591_s3, 512, %s44_s15, [#allocation7], %s479_s27, %s479_s27, %s480_s28  }
  0x33   :  { %471 = dma.done.wait [#allocation4], 256  }
  0x34   :  { %472 = vsyncadd [#allocation4], 4294967040 }
  0x35   :  { %473 = dma.done.wait [#allocation7], 1024  }
  0x36   :  { %474 = vsyncadd [#allocation7], 4294966272  ;;  %vm74_vm0 = vcmask 261120   ;;  %v66_v0 = vld [vmem:[#allocation6] sm:$0xff]  ;;  %v67_v1 = vld [vmem:[#allocation6 + $0x8] sm:$0xff]  ;;  %v70_v8 = vlaneseq }
  0x37   :  { %v68_v2 = vld [vmem:[#allocation6 + $0x10] sm:$0xff]  ;;  %v353_v3 = vpack.c.bf16 %v67_v1, %v66_v0  ;;  %v69_v4 = vld [vmem:[#allocation6 + $0x18] sm:$0xff]  ;;  %v63_v11 = vld [vmem:[%s590_s2] sm:$0x7]  ;;  %s482_s2 = smov [#allocation9]  }
  0x38   :  { %v64_v5 = vld [vmem:[#allocation3] sm:$0xff]  ;;  %v357_v6 = vpack.c.bf16 %v69_v4, %v68_v2  ;;  %v65_v7 = vld [vmem:[#allocation3 + $0x8] sm:$0xff]  ;;  %v71_v9 = vshrl.u32 %v70_v8, 7  ;;  %v209_v39 = vld [vmem:[#allocation8] sm:$0xff]  ;;  %s302_s26 = sshll.u32 %s482_s2, 4  ;;  %s303_s26 = int_to_ptr.vmem [resolvable:$true] %s302_s26 }
  0x39   :  { %339 = vmatprep.mubr.msk.f32.mxu0 %vm74_vm0, %v64_v5  ;;  %354 = vmatprep.subr.bf16.mxu0 %v353_v3  ;;  %v210_v40 = vld [vmem:[#allocation8 + $0x8] sm:$0xff]  ;;  %v211_v42 = vld [vmem:[#allocation8 + $0x10] sm:$0xff]  ;;  %v212_v43 = vld [vmem:[#allocation8 + $0x18] sm:$0xff]  ;;  %s449_s29 = scalar_lea.vmem %s303_s26, 256  ;;  %p454_p11 = scmp.lt.s32.totalorder %s303_s26, %s303_s26 }
  0x3a   :  { %356 = vmatpush3.bf16.msra.mxu0 %v353_v3  ;;  %v72_v10 = vsub.s32 0, %v71_v9  ;;  %v361_v41 = vpack.c.bf16 %v210_v40, %v209_v39  ;;  %v365_v44 = vpack.c.bf16 %v212_v43, %v211_v42  ;;  %v195_v51 = vsub.s32 1, %v71_v9  ;;  %p450_p10 = scmp.ne.s32.totalorder %s303_s26, %s449_s29  ;;  %p455_p12 = scmp.lt.s32.totalorder %s449_s29, %s449_s29 }
  0x3b   :  { %358 = vmatprep.subr.bf16.mxu0 %v357_v6  ;;  %v201_v52 = vsub.s32 2, %v71_v9 }
  0x3c   :  { %v73_v12 = vrot.slane %v63_v11, %v72_v10  ;;  %362 = vmatprep.subr.bf16.mxu1 %v361_v41  ;;  %v196_v53 = vrot.slane %v63_v11, %v195_v51  ;;  %p456_p13 = por %p455_p12, %p454_p11 }
  0x3d   :  { %364 = vmatpush3.bf16.msra.mxu1 %v361_v41  ;;  %v202_v55 = vrot.slane %v63_v11, %v201_v52 }
  0x3e   :  { %360 = vmatpush3.bf16.msra.mxu0 %v357_v6  ;;  %366 = vmatprep.subr.bf16.mxu1 %v365_v44  ;;  %p457_p0 = pnand %p456_p13, %p450_p10 }
  0x41   :  { %340 = vmatmul.mubr.msk.f32.vlgmr.msra.gmra.mrb[0].mxu0 %vm74_vm0, %v65_v7  ;;  %368 = vmatpush3.bf16.msra.mxu1 %v365_v44 }
 0x114   :  { %v341_v13 = vpop.f32.mrb[0].mxu0 }
 0x115   :  { %v153_v14 = vadd.f32 %v341_v13, %v73_v12  ;;  %v147_v15 = vpop.f32.mrb[1].mxu0 }
 0x116   :  { %v148_v16 = vadd.f32 %v147_v15, %v73_v12 }
 0x117   :  { %v159_v17 = vmul.f32 0.70710677, %v153_v14  ;;  %v157_v24 = vmul.f32 0.5, %v153_v14 }
 0x118   :  { %v158_v18 = vmul.f32 0.70710677, %v148_v16  ;;  %v156_v21 = vmul.f32 0.5, %v148_v16 }
 0x119   :  { %375 = verf.f32 %v159_v17 }
 0x11a   :  { %377 = verf.f32 %v158_v18 }
 0x123   :  { %v376_v19 = vpop.eup %375 }
 0x124   :  { %v378_v20 = vpop.eup %377  ;;  %v163_v23 = vadd.f32 1.0, %v376_v19 }
 0x125   :  { %v162_v22 = vadd.f32 1.0, %v378_v20 }
 0x126   :  { %v165_v27 = vmul.f32 %v163_v23, %v157_v24 }
 0x127   :  { %v164_v25 = vmul.f32 %v162_v22, %v156_v21 }
 0x128   :  { %v169_v28 = vsel %vm74_vm0, %v165_v27, 0.0 }
 0x129   :  { %v166_v26 = vsel %vm74_vm0, %v164_v25, 0.0 }
 0x12a   :  { %167 = vadd.xlane.f32.xlu0 %v166_v26 }
 0x12e   :  { %170 = vadd.xlane.f32.xlu0 %v169_v28 }
 0x1b7   :  { %v168_v29 = vpop.xlane.xlu0 %167 }
 0x1b8   :  { %v173_v30 = vmul.f32 0.03125, %v168_v29 }
 0x1ba   :  { %v175_v31 = vsub.f32 %v164_v25, %v173_v30 }
 0x1bb   :  { %v171_v32 = vpop.xlane.xlu0 %170 }
 0x1bc   :  { %v174_v33 = vmul.f32 0.03125, %v171_v32  ;;  %v177_v34 = vmul.f32 %v175_v31, %v175_v31 }
 0x1be   :  { %v176_v35 = vsub.f32 %v165_v27, %v174_v33  ;;  %v179_v36 = vsel %vm74_vm0, %v177_v34, 0.0 }
 0x1bf   :  { %180 = vadd.xlane.f32.xlu1 %v179_v36 }
 0x1c0   :  { %v178_v37 = vmul.f32 %v176_v35, %v176_v35 }
 0x1c2   :  { %v182_v38 = vsel %vm74_vm0, %v178_v37, 0.0 }
 0x1c3   :  { %183 = vadd.xlane.f32.xlu1 %v182_v38 }
 0x24c   :  { %v181_v45 = vpop.xlane.xlu1 %180 }
 0x24d   :  { %v185_v46 = vmul.f32 0.03125, %v181_v45 }
 0x24f   :  { %v187_v47 = vadd.f32 1e-12, %v185_v46 }
 0x250   :  { %v184_v48 = vpop.xlane.xlu1 %183 }
 0x251   :  { %379 = vrsqrt.f32 %v187_v47  ;;  %v186_v49 = vmul.f32 0.03125, %v184_v48 }
 0x253   :  { %v188_v50 = vadd.f32 1e-12, %v186_v49 }
 0x255   :  { %381 = vrsqrt.f32 %v188_v50 }
 0x25b   :  { %v380_v54 = vpop.eup %379 }
 0x25c   :  { %v191_v56 = vmul.f32 %v380_v54, %v175_v31 }
 0x25e   :  { %v197_v57 = vmul.f32 %v196_v53, %v191_v56 }
 0x25f   :  { %v382_v58 = vpop.eup %381 }
 0x260   :  { %v203_v59 = vadd.f32 %v202_v55, %v197_v57  ;;  %v192_v60 = vmul.f32 %v382_v58, %v176_v35 }
 0x262   :  { %205 = vst.msk [vmem:[#allocation2] sm:$0xff] %vm74_vm0, %v203_v59  ;;  %v198_v61 = vmul.f32 %v196_v53, %v192_v60 }
 0x264   :  { %v204_v62 = vadd.f32 %v202_v55, %v198_v61 }
 0x266   :  { %206 = vst.msk [vmem:[#allocation2 + $0x8] sm:$0xff] %vm74_vm0, %v204_v62 }
 0x269   :  { %v207_v63 = vld [vmem:[#allocation2] sm:$0xff] }
 0x26a   :  { %350 = vmatprep.mubr.msk.f32.mxu1 %vm74_vm0, %v207_v63 }
 0x26d   :  { %v208_v0 = vld [vmem:[#allocation2 + $0x8] sm:$0xff] }
 0x26e   :  { %351 = vmatmul.mubr.msk.f32.vlgmr.msra.gmra.mrb[0].mxu1 %vm74_vm0, %v208_v0 }
 0x341   :  { %v352_v1 = vpop.f32.mrb[0].mxu1 }
 0x342   :  { %296 = vst [vmem:[#allocation9 + $0x8] sm:$0xff] %v352_v1  ;;  %v286_v2 = vpop.f32.mrb[1].mxu1 }
 0x343   :  { %295 = vst [vmem:[#allocation9] sm:$0xff] %v286_v2 }
 0x344   :  { %460 = shalt.err (!%p457_p0)
}
 0x345   :  { %s461_s6 = scalar_lea.hbm %s592_s4, 256 }
 0x346   :  { %p462_p1 = scmp.ne.s32.totalorder %s592_s4, %s461_s6  ;;  %p465_p2 = scmp.lt.u32.totalorder %s461_s6, %s592_s4 }
 0x348   :  { %p467_p3 = pnand %p465_p2, %p462_p1 }
 0x34a   :  { %470 = shalt.err (!%p467_p3)
}
 0x34b   :  { %308 = dma.vmem_to_hbm [thread:$0]  %s303_s26, 256, %s592_s4, [#allocation5], %s479_s27, %s479_s27, %s480_s28  }
 0x34c   :  { %475 = dma.done.wait [#allocation5], 256  }
 0x34d   :  { %476 = vsyncadd [#allocation5], 4294967040 }
 0x34e   :  { %312 = vsyncpa [#allocation4], 1 }
 0x34f   :  { %313 = vsyncpa [#allocation7], 1 }
 0x350   :  { %314 = vsyncpa [#allocation5], 1 }

// kernel: tpu_custom_call.1
= control target key start
LH: loop header
LB: loop body
LE: loop exit
PB: predicated region body
PF: predicated region fallthrough
CT: control target
= control target key end

     0   :  { %9 = vsyncpa [#allocation4], 0  ;;  %s588_s0 = inlined_call_operand.hbm [shape: f32[16,32], index: 0, kind: input, shape index: {}]   ;;  %s589_s1 = inlined_call_operand.hbm [shape: f32[32,32], index: 1, kind: input, shape index: {}]   ;;  %s590_s2 = inlined_call_operand.vmem [shape: f32[3,32], index: 2, kind: input, shape index: {}]   ;;  %s591_s3 = inlined_call_operand.hbm [shape: f32[32,128], index: 3, kind: input, shape index: {}]   ;;  %s592_s4 = inlined_call_operand.hbm [shape: f32[16,128], index: 4, kind: output, shape index: {}]  }
   0x1   :  { %10 = vsyncpa [#allocation7], 0 }
   0x2   :  { %11 = vsyncpa [#allocation5], 0  ;;  %s477_s15 = smov [#allocation6]   ;;  %s478_s17 = smov [#allocation3]  }
   0x3   :  { %s29_s16 = sshll.u32 %s477_s15, 4  ;;  %s17_s18 = sshll.u32 %s478_s17, 4  ;;  %s30_s16 = int_to_ptr.vmem [resolvable:$true] %s29_s16  ;;  %s508_s18 = int_to_ptr.vmem [resolvable:$true] %s17_s18 }
   0x4   :  { %s383_s21 = scalar_lea.hbm %s589_s1, 512 }
   0x5   :  { %p384_p0 = scmp.ne.s32.totalorder %s589_s1, %s383_s21  ;;  %p387_p1 = scmp.lt.u32.totalorder %s383_s21, %s589_s1 }
   0x7   :  { %p389_p2 = pnand %p387_p1, %p384_p0 }
   0x9   :  { %392 = shalt.err (!%p389_p2)
}
   0xa   :  { %s393_s26 = scalar_lea.vmem %s30_s16, 512  ;;  %p398_p4 = scmp.lt.s32.totalorder %s30_s16, %s30_s16 }
   0xb   :  { %p394_p3 = scmp.ne.s32.totalorder %s30_s16, %s393_s26  ;;  %p399_p5 = scmp.lt.s32.totalorder %s393_s26, %s393_s26 }
   0xd   :  { %p400_p6 = por %p399_p5, %p398_p4 }
   0xf   :  { %p401_p7 = pnand %p400_p6, %p394_p3 }
  0x11   :  { %404 = shalt.err (!%p401_p7)
}
  0x12   :  { %s479_s27 = smov 128   ;;  %s480_s28 = smov 8  }
  0x13   :  { %35 = dma.hbm_to_vmem [thread:$0]  %s589_s1, 512, %s30_s16, [#allocation7], %s479_s27, %s479_s27, %s480_s28  }
  0x14   :  { %s405_s7 = scalar_lea.hbm %s588_s0, 256 }
  0x15   :  { %p406_p8 = scmp.ne.s32.totalorder %s588_s0, %s405_s7  ;;  %p409_p9 = scmp.lt.u32.totalorder %s405_s7, %s588_s0 }
  0x17   :  { %p411_p10 = pnand %p409_p9, %p406_p8 }
  0x19   :  { %414 = shalt.err (!%p411_p10)
}
  0x1a   :  { %s415_s12 = scalar_lea.vmem %s508_s18, 256  ;;  %p420_p12 = scmp.lt.s32.totalorder %s508_s18, %s508_s18 }
  0x1b   :  { %p416_p11 = scmp.ne.s32.totalorder %s508_s18, %s415_s12  ;;  %p421_p13 = scmp.lt.s32.totalorder %s415_s12, %s415_s12 }
  0x1d   :  { %p422_p0 = por %p421_p13, %p420_p12 }
  0x1f   :  { %p423_p1 = pnand %p422_p0, %p416_p11 }
  0x21   :  { %426 = shalt.err (!%p423_p1)
}
  0x22   :  { %23 = dma.hbm_to_vmem [thread:$0]  %s588_s0, 256, %s508_s18, [#allocation4], %s479_s27, %s479_s27, %s480_s28  }
  0x23   :  { %s481_s14 = smov [#allocation8]   ;;  %s427_s19 = scalar_lea.hbm %s591_s3, 512 }
  0x24   :  { %s43_s15 = sshll.u32 %s481_s14, 4  ;;  %p428_p2 = scmp.ne.s32.totalorder %s591_s3, %s427_s19  ;;  %s44_s15 = int_to_ptr.vmem [resolvable:$true] %s43_s15 }
  0x25   :  { %p431_p3 = scmp.lt.u32.totalorder %s427_s19, %s591_s3 }
  0x27   :  { %p433_p4 = pnand %p431_p3, %p428_p2 }
  0x29   :  { %436 = shalt.err (!%p433_p4)
}
  0x2a   :  { %s437_s24 = scalar_lea.vmem %s44_s15, 512  ;;  %p442_p6 = scmp.lt.s32.totalorder %s44_s15, %s44_s15 }
  0x2b   :  { %p438_p5 = scmp.ne.s32.totalorder %s44_s15, %s437_s24  ;;  %p443_p7 = scmp.lt.s32.totalorder %s437_s24, %s437_s24 }
  0x2d   :  { %p444_p8 = por %p443_p7, %p442_p6 }
  0x2f   :  { %p445_p9 = pnand %p444_p8, %p438_p5 }
  0x31   :  { %448 = shalt.err (!%p445_p9)
}
  0x32   :  { %49 = dma.hbm_to_vmem [thread:$0]  %s591_s3, 512, %s44_s15, [#allocation7], %s479_s27, %s479_s27, %s480_s28  }
  0x33   :  { %471 = dma.done.wait [#allocation4], 256  }
  0x34   :  { %472 = vsyncadd [#allocation4], 4294967040 }
  0x35   :  { %473 = dma.done.wait [#allocation7], 1024  }
  0x36   :  { %474 = vsyncadd [#allocation7], 4294966272  ;;  %vm74_vm0 = vcmask 261120   ;;  %v66_v0 = vld [vmem:[#allocation6] sm:$0xff]  ;;  %v67_v1 = vld [vmem:[#allocation6 + $0x8] sm:$0xff]  ;;  %v70_v8 = vlaneseq }
  0x37   :  { %v68_v2 = vld [vmem:[#allocation6 + $0x10] sm:$0xff]  ;;  %v353_v3 = vpack.c.bf16 %v67_v1, %v66_v0  ;;  %v69_v4 = vld [vmem:[#allocation6 + $0x18] sm:$0xff]  ;;  %v63_v11 = vld [vmem:[%s590_s2] sm:$0x7]  ;;  %s482_s2 = smov [#allocation9]  }
  0x38   :  { %v64_v5 = vld [vmem:[#allocation3] sm:$0xff]  ;;  %v357_v6 = vpack.c.bf16 %v69_v4, %v68_v2  ;;  %v65_v7 = vld [vmem:[#allocation3 + $0x8] sm:$0xff]  ;;  %v71_v9 = vshrl.u32 %v70_v8, 7  ;;  %v209_v39 = vld [vmem:[#allocation8] sm:$0xff]  ;;  %s302_s26 = sshll.u32 %s482_s2, 4  ;;  %s303_s26 = int_to_ptr.vmem [resolvable:$true] %s302_s26 }
  0x39   :  { %339 = vmatprep.mubr.msk.f32.mxu0 %vm74_vm0, %v64_v5  ;;  %354 = vmatprep.subr.bf16.mxu0 %v353_v3  ;;  %v210_v40 = vld [vmem:[#allocation8 + $0x8] sm:$0xff]  ;;  %v211_v42 = vld [vmem:[#allocation8 + $0x10] sm:$0xff]  ;;  %v212_v43 = vld [vmem:[#allocation8 + $0x18] sm:$0xff]  ;;  %s449_s29 = scalar_lea.vmem %s303_s26, 256  ;;  %p454_p11 = scmp.lt.s32.totalorder %s303_s26, %s303_s26 }
  0x3a   :  { %356 = vmatpush3.bf16.msra.mxu0 %v353_v3  ;;  %v72_v10 = vsub.s32 0, %v71_v9  ;;  %v361_v41 = vpack.c.bf16 %v210_v40, %v209_v39  ;;  %v365_v44 = vpack.c.bf16 %v212_v43, %v211_v42  ;;  %v195_v51 = vsub.s32 1, %v71_v9  ;;  %p450_p10 = scmp.ne.s32.totalorder %s303_s26, %s449_s29  ;;  %p455_p12 = scmp.lt.s32.totalorder %s449_s29, %s449_s29 }
  0x3b   :  { %358 = vmatprep.subr.bf16.mxu0 %v357_v6  ;;  %v201_v52 = vsub.s32 2, %v71_v9 }
  0x3c   :  { %v73_v12 = vrot.slane %v63_v11, %v72_v10  ;;  %362 = vmatprep.subr.bf16.mxu1 %v361_v41  ;;  %v196_v53 = vrot.slane %v63_v11, %v195_v51  ;;  %p456_p13 = por %p455_p12, %p454_p11 }
  0x3d   :  { %364 = vmatpush3.bf16.msra.mxu1 %v361_v41  ;;  %v202_v55 = vrot.slane %v63_v11, %v201_v52 }
  0x3e   :  { %360 = vmatpush3.bf16.msra.mxu0 %v357_v6  ;;  %366 = vmatprep.subr.bf16.mxu1 %v365_v44  ;;  %p457_p0 = pnand %p456_p13, %p450_p10 }
  0x41   :  { %340 = vmatmul.mubr.msk.f32.vlgmr.msra.gmra.mrb[0].mxu0 %vm74_vm0, %v65_v7  ;;  %368 = vmatpush3.bf16.msra.mxu1 %v365_v44 }
 0x114   :  { %v341_v13 = vpop.f32.mrb[0].mxu0 }
 0x115   :  { %v153_v14 = vadd.f32 %v341_v13, %v73_v12  ;;  %v147_v15 = vpop.f32.mrb[1].mxu0 }
 0x116   :  { %v148_v16 = vadd.f32 %v147_v15, %v73_v12 }
 0x117   :  { %v159_v17 = vmul.f32 0.70710677, %v153_v14  ;;  %v157_v24 = vmul.f32 0.5, %v153_v14 }
 0x118   :  { %v158_v18 = vmul.f32 0.70710677, %v148_v16  ;;  %v156_v21 = vmul.f32 0.5, %v148_v16 }
 0x119   :  { %375 = verf.f32 %v159_v17 }
 0x11a   :  { %377 = verf.f32 %v158_v18 }
 0x123   :  { %v376_v19 = vpop.eup %375 }
 0x124   :  { %v378_v20 = vpop.eup %377  ;;  %v163_v23 = vadd.f32 1.0, %v376_v19 }
 0x125   :  { %v162_v22 = vadd.f32 1.0, %v378_v20 }
 0x126   :  { %v165_v27 = vmul.f32 %v163_v23, %v157_v24 }
 0x127   :  { %v164_v25 = vmul.f32 %v162_v22, %v156_v21 }
 0x128   :  { %v169_v28 = vsel %vm74_vm0, %v165_v27, 0.0 }
 0x129   :  { %v166_v26 = vsel %vm74_vm0, %v164_v25, 0.0 }
 0x12a   :  { %167 = vadd.xlane.f32.xlu0 %v166_v26 }
 0x12e   :  { %170 = vadd.xlane.f32.xlu0 %v169_v28 }
 0x1b7   :  { %v168_v29 = vpop.xlane.xlu0 %167 }
 0x1b8   :  { %v173_v30 = vmul.f32 0.03125, %v168_v29 }
 0x1ba   :  { %v175_v31 = vsub.f32 %v164_v25, %v173_v30 }
 0x1bb   :  { %v171_v32 = vpop.xlane.xlu0 %170 }
 0x1bc   :  { %v174_v33 = vmul.f32 0.03125, %v171_v32  ;;  %v177_v34 = vmul.f32 %v175_v31, %v175_v31 }
 0x1be   :  { %v176_v35 = vsub.f32 %v165_v27, %v174_v33  ;;  %v179_v36 = vsel %vm74_vm0, %v177_v34, 0.0 }
 0x1bf   :  { %180 = vadd.xlane.f32.xlu1 %v179_v36 }
 0x1c0   :  { %v178_v37 = vmul.f32 %v176_v35, %v176_v35 }
 0x1c2   :  { %v182_v38 = vsel %vm74_vm0, %v178_v37, 0.0 }
 0x1c3   :  { %183 = vadd.xlane.f32.xlu1 %v182_v38 }
 0x24c   :  { %v181_v45 = vpop.xlane.xlu1 %180 }
 0x24d   :  { %v185_v46 = vmul.f32 0.03125, %v181_v45 }
 0x24f   :  { %v187_v47 = vadd.f32 1e-12, %v185_v46 }
 0x250   :  { %v184_v48 = vpop.xlane.xlu1 %183 }
 0x251   :  { %379 = vrsqrt.f32 %v187_v47  ;;  %v186_v49 = vmul.f32 0.03125, %v184_v48 }
 0x253   :  { %v188_v50 = vadd.f32 1e-12, %v186_v49 }
 0x255   :  { %381 = vrsqrt.f32 %v188_v50 }
 0x25b   :  { %v380_v54 = vpop.eup %379 }
 0x25c   :  { %v191_v56 = vmul.f32 %v380_v54, %v175_v31 }
 0x25e   :  { %v197_v57 = vmul.f32 %v196_v53, %v191_v56 }
 0x25f   :  { %v382_v58 = vpop.eup %381 }
 0x260   :  { %v203_v59 = vadd.f32 %v202_v55, %v197_v57  ;;  %v192_v60 = vmul.f32 %v382_v58, %v176_v35 }
 0x262   :  { %205 = vst.msk [vmem:[#allocation2] sm:$0xff] %vm74_vm0, %v203_v59  ;;  %v198_v61 = vmul.f32 %v196_v53, %v192_v60 }
 0x264   :  { %v204_v62 = vadd.f32 %v202_v55, %v198_v61 }
 0x266   :  { %206 = vst.msk [vmem:[#allocation2 + $0x8] sm:$0xff] %vm74_vm0, %v204_v62 }
 0x269   :  { %v207_v63 = vld [vmem:[#allocation2] sm:$0xff] }
 0x26a   :  { %350 = vmatprep.mubr.msk.f32.mxu1 %vm74_vm0, %v207_v63 }
 0x26d   :  { %v208_v0 = vld [vmem:[#allocation2 + $0x8] sm:$0xff] }
 0x26e   :  { %351 = vmatmul.mubr.msk.f32.vlgmr.msra.gmra.mrb[0].mxu1 %vm74_vm0, %v208_v0 }
 0x341   :  { %v352_v1 = vpop.f32.mrb[0].mxu1 }
 0x342   :  { %296 = vst [vmem:[#allocation9 + $0x8] sm:$0xff] %v352_v1  ;;  %v286_v2 = vpop.f32.mrb[1].mxu1 }
 0x343   :  { %295 = vst [vmem:[#allocation9] sm:$0xff] %v286_v2 }
 0x344   :  { %460 = shalt.err (!%p457_p0)
}
 0x345   :  { %s461_s6 = scalar_lea.hbm %s592_s4, 256 }
 0x346   :  { %p462_p1 = scmp.ne.s32.totalorder %s592_s4, %s461_s6  ;;  %p465_p2 = scmp.lt.u32.totalorder %s461_s6, %s592_s4 }
 0x348   :  { %p467_p3 = pnand %p465_p2, %p462_p1 }
 0x34a   :  { %470 = shalt.err (!%p467_p3)
}
 0x34b   :  { %308 = dma.vmem_to_hbm [thread:$0]  %s303_s26, 256, %s592_s4, [#allocation5], %s479_s27, %s479_s27, %s480_s28  }
 0x34c   :  { %475 = dma.done.wait [#allocation5], 256  }
 0x34d   :  { %476 = vsyncadd [#allocation5], 4294967040 }
 0x34e   :  { %312 = vsyncpa [#allocation4], 1 }
 0x34f   :  { %313 = vsyncpa [#allocation7], 1 }
 0x350   :  { %314 = vsyncpa [#allocation5], 1 }

</bundles_post_ra>
